<compile_context>
chip_gen: v7x
topology: tpu7x:2x2x1
jax: 0.10.0
libtpu: 0.0.40
codegen_flags: <defaults>
</compile_context>

<pallas_src>
import functools

import jax
import jax.numpy as jnp
from jax.experimental import pallas as pl
from jax.experimental.pallas import tpu as pltpu


def _round_up(a: int, m: int) -> int:
    return ((a + m - 1) // m) * m


# --------------------------------------------------------------------------- kernel
def _ff_kernel(x_ref, w1_ref, b1_ref, w2_ref, b2_ref, g_ref, beta_ref, o_ref, acc_ref,
               *, d_true, mm_dtype):
    # x_ref: (tm, D_pad); w1: (D_pad, tf); w2: (tf, D_pad);
    # b1: (1, tf) f32; b2/gamma/beta: (1, D_pad) f32; acc: (tm, D_pad) f32 scratch.
    k = pl.program_id(1)

    @pl.when(k == 0)
    def _():
        acc_ref[...] = jnp.zeros_like(acc_ref)

    x = x_ref[...]
    xm = x if mm_dtype is None else x.astype(mm_dtype)

    # Linear 1 + ReLU over this d_ff block (MXU matmul, f32 accumulate).
    h = jnp.dot(xm, w1_ref[...], preferred_element_type=jnp.float32)
    h = jnp.maximum(h + b1_ref[...], 0.0)

    # Linear 2 partial product; accumulate across d_ff blocks in f32 scratch.
    w2 = w2_ref[...]
    acc_ref[...] += jnp.dot(h.astype(w2.dtype), w2, preferred_element_type=jnp.float32)

    @pl.when(k == pl.num_programs(1) - 1)
    def _():
        y = acc_ref[...] + b2_ref[...]
        z = x.astype(jnp.float32) + y                      # residual in f32
        # One-pass LayerNorm statistics over the TRUE feature count.  Padded lanes are
        # exactly zero (x pad = 0, W2 pad = 0, b2 pad = 0) so they add nothing to either
        # sum; dividing by d_true keeps mean/var identical to the unpadded computation.
        inv_d = jnp.float32(1.0 / d_true)
        mean = jnp.sum(z, axis=-1, keepdims=True) * inv_d
        ex2 = jnp.sum(z * z, axis=-1, keepdims=True) * inv_d
        var = ex2 - mean * mean
        zn = (z - mean) * jax.lax.rsqrt(var + 1e-5)        # PyTorch LayerNorm eps
        o_ref[...] = (zn * g_ref[...] + beta_ref[...]).astype(o_ref.dtype)


# --------------------------------------------------------------------------- sizing
def _vmem_capacity_bytes() -> int:
    try:
        return int(pltpu.get_tpu_info().vmem_capacity_bytes)
    except Exception:
        return 64 << 20          # conservative: v7x per-TensorCore VMEM


def _footprint(tm, tf, d, item_x, item_w, nk):
    wbuf = 1 if nk == 1 else 2                      # resident vs. re-streamed weights
    weights = wbuf * 2 * d * tf * item_w            # W1 block + W2 block
    small = wbuf * tf * 4 + 3 * d * 4               # b1 + (b2, gamma, beta) in f32
    xio = 2 * 2 * tm * d * item_x                   # double-buffered x + out tiles
    acc = tm * d * 4                                # accumulator scratch
    inter = tm * tf * 4 + 4 * tm * d * 4            # hidden tile + LN temporaries (f32)
    return weights + small + xio + acc + inter


def _pick_tiles(N, D_pad, F_pad, item_x, item_w, row_tile, budget, max_ff_block):
    n8 = _round_up(max(N, 1), 8)
    tm = max(8, min(_round_up(row_tile, 8), n8))
    # Guarantee >= 2 row-grid steps when there are enough rows (keeps v7x's 2 TCs busy
    # and gives the input/output pipeline something to overlap).
    if n8 >= 16 and _round_up(N, tm) // tm < 2:
        tm = _round_up((n8 + 1) // 2, 8)

    cap_tf = F_pad if max_ff_block is None else max(128, min(F_pad, _round_up(max_ff_block, 128)))
    cands = list(dict.fromkeys(
        c for c in (F_pad, 4096, 2048, 1024, 512, 256, 128) if c <= cap_tf))

    chosen = None
    for tf in cands:                                 # largest (fewest F steps) first
        f_work = _round_up(F_pad, tf)
        nk = f_work // tf
        if _footprint(tm, tf, D_pad, item_x, item_w, nk) <= budget:
            chosen = (tf, f_work, nk)
            break
    if chosen is None:
        tf = 128
        f_work = _round_up(F_pad, tf)
        nk = f_work // tf
        while tm > 128 and _footprint(tm, tf, D_pad, item_x, item_w, nk) > budget:
            tm = max(128, _round_up(tm // 2, 8))
        chosen = (tf, f_work, nk)

    tf, f_work, nk = chosen
    n_pad = _round_up(N, tm)
    return tm, n_pad, tf, f_work, nk


# --------------------------------------------------------------------------- builder
def _build_call(n_pad, tm, D_pad, F_work, tf, d_true, x_dtype, mm_dtype,
                vmem_limit, cost, use_buffered_hint):
    nk = F_work // tf

    def const_spec(shape, imap):
        # Grid-constant operands: single-buffer so they cost 1x (not 2x) VMEM.
        if use_buffered_hint:
            return pl.BlockSpec(shape, imap, pipeline_mode=pl.Buffered(1))
        return pl.BlockSpec(shape, imap)

    # d_ff-blocked operands are only grid-constant when nk == 1; when re-streamed they
    # need the default double-buffering to hide the DMA.
    w_spec = const_spec if nk == 1 else (lambda shape, imap: pl.BlockSpec(shape, imap))

    in_specs = [
        pl.BlockSpec((tm, D_pad), lambda i, k: (i, 0)),     # x rows (pipelined)
        w_spec((D_pad, tf), lambda i, k: (0, k)),           # W1 block
        w_spec((1, tf), lambda i, k: (0, k)),               # b1 block (f32)
        w_spec((tf, D_pad), lambda i, k: (k, 0)),           # W2 block
        const_spec((1, D_pad), lambda i, k: (0, 0)),        # b2 (f32)
        const_spec((1, D_pad), lambda i, k: (0, 0)),        # gamma (f32)
        const_spec((1, D_pad), lambda i, k: (0, 0)),        # beta (f32)
    ]

    kernel = functools.partial(_ff_kernel, d_true=d_true, mm_dtype=mm_dtype)

    return pl.pallas_call(
        kernel,
        out_shape=jax.ShapeDtypeStruct((n_pad, D_pad), x_dtype),
        grid_spec=pltpu.PrefetchScalarGridSpec(
            num_scalar_prefetch=0,
            grid=(n_pad // tm, nk),                          # d_ff reduction axis innermost
            in_specs=in_specs,
            out_specs=pl.BlockSpec((tm, D_pad), lambda i, k: (i, 0)),
            scratch_shapes=[pltpu.VMEM((tm, D_pad), jnp.float32)],
        ),
        compiler_params=pltpu.CompilerParams(
            dimension_semantics=("parallel", "arbitrary"),   # rows shard across TCs
            vmem_limit_bytes=vmem_limit,
        ),
        cost_estimate=cost,
    )


# --------------------------------------------------------------------------- wrapper
def positionwise_ff(x, w1, b1, w2, b2, gamma, beta, *, row_tile=512,
                    matmul_dtype=None, max_ff_block=None):
    """x: (seq, batch, d_model). Weights stored as (in, out) so the kernel does x @ W.

    matmul_dtype: optional dtype (e.g. jnp.bfloat16) for the two matmuls (f32 accumulate;
        residual + LayerNorm always stay f32).  Opt-in fast path for f32 callers.
    max_ff_block: optional cap on the d_ff block size (forces the accumulator path;
        mainly for testing on small shapes).
    """
    S, B, D = x.shape
    F = w1.shape[1]
    N = S * B

    x_dtype = x.dtype
    w_dtype = jnp.dtype(w1.dtype) if matmul_dtype is None else jnp.dtype(matmul_dtype)
    mm_dtype = None if matmul_dtype is None else w_dtype

    D_pad = _round_up(D, 128)
    F_pad = _round_up(F, 128)

    cap = _vmem_capacity_bytes()
    budget = int(0.8 * cap)
    item_x = jnp.dtype(x_dtype).itemsize
    item_w = jnp.dtype(w_dtype).itemsize
    tm, n_pad, tf, F_work, nk = _pick_tiles(N, D_pad, F_pad, item_x, item_w,
                                            row_tile, budget, max_ff_block)

    # ---- pad operands to lane-dense shapes (zero padding is exact; see kernel LN) ----
    x2 = x.reshape(N, D)
    x2 = jnp.pad(x2, ((0, n_pad - N), (0, D_pad - D)))

    w1c = w1.astype(w_dtype) if matmul_dtype is not None else w1
    w2c = w2.astype(w_dtype) if matmul_dtype is not None else w2
    w1p = jnp.pad(w1c, ((0, D_pad - D), (0, F_work - F)))
    w2p = jnp.pad(w2c, ((0, F_work - F), (0, D_pad - D)))

    # Biases / LN affine pre-cast to f32 (tiny HBM cost, removes per-step converts).
    b1p = jnp.pad(b1.astype(jnp.float32), (0, F_work - F)).reshape(1, F_work)
    b2p = jnp.pad(b2.astype(jnp.float32), (0, D_pad - D)).reshape(1, D_pad)
    gp = jnp.pad(gamma.astype(jnp.float32), (0, D_pad - D)).reshape(1, D_pad)
    bp = jnp.pad(beta.astype(jnp.float32), (0, D_pad - D)).reshape(1, D_pad)

    n_row_tiles = n_pad // tm
    weight_bytes = 2 * D_pad * F_work * item_w + (F_work + 3 * D_pad) * 4
    cost = pl.CostEstimate(
        flops=int(4 * n_pad * D_pad * F_work),               # two matmuls, 2*M*K*N each
        transcendentals=int(n_pad),                          # one rsqrt per row
        bytes_accessed=int(2 * n_pad * D_pad * item_x
                           + weight_bytes * (1 if nk == 1 else n_row_tiles)),
    )

    footprint = _footprint(tm, tf, D_pad, item_x, item_w, nk)
    vmem_limit = int(min(budget, max(32 << 20, int(1.5 * footprint))))

    try:
        call = _build_call(n_pad, tm, D_pad, F_work, tf, D, x_dtype, mm_dtype,
                           vmem_limit, cost, use_buffered_hint=True)
        out = call(x2, w1p, b1p, w2p, b2p, gp, bp)
    except (TypeError, ValueError, NotImplementedError):
        # Older jax without BlockSpec(pipeline_mode=...): identical semantics, just 2x
        # weight VMEM.  Anything else (e.g. genuine VMEM OOM) propagates.
        call = _build_call(n_pad, tm, D_pad, F_work, tf, D, x_dtype, mm_dtype,
                           vmem_limit, cost, use_buffered_hint=False)
        out = call(x2, w1p, b1p, w2p, b2p, gp, bp)

    return out[:N, :D].reshape(S, B, D)


# --------------------------------------------------------------------------- reference
def _reference(x, w1, b1, w2, b2, gamma, beta):
    h = jnp.maximum(x @ w1 + b1, 0.0)
    y = h @ w2 + b2
    z = x + y
    mean = jnp.mean(z, axis=-1, keepdims=True)
    var = jnp.mean((z - mean) ** 2, axis=-1, keepdims=True)
    return (z - mean) / jnp.sqrt(var + 1e-5) * gamma + beta


if __name__ == "__main__":
    # Deliberately NON-lane-aligned feature sizes (like Transformer-XL's 410/2100) to
    # exercise the padding + true-D LayerNorm path; N = 48 rows -> 2 row-grid steps.
    d_model, d_ff = 120, 312
    seq, batch = 12, 4

    key = jax.random.PRNGKey(0)
    k = jax.random.split(key, 7)
    x = jax.random.normal(k[0], (seq, batch, d_model), jnp.float32)
    # nn.Linear stores (out, in) in torch; we keep (in, out) so the kernel does x @ W.
    w1 = jax.random.normal(k[1], (d_model, d_ff), jnp.float32) * (1.0 / d_model ** 0.5)
    b1 = jax.random.normal(k[2], (d_ff,), jnp.float32) * 0.01
    w2 = jax.random.normal(k[3], (d_ff, d_model), jnp.float32) * (1.0 / d_ff ** 0.5)
    b2 = jax.random.normal(k[4], (d_model,), jnp.float32) * 0.01
    gamma = 1.0 + 0.1 * jax.random.normal(k[5], (d_model,), jnp.float32)
    beta = 0.05 * jax.random.normal(k[6], (d_model,), jnp.float32)

    ref = _reference(x, w1, b1, w2, b2, gamma, beta)

    # 1) f32 path (weights resident, single F step).
    out = positionwise_ff(x, w1, b1, w2, b2, gamma, beta)
    jax.block_until_ready(out)
    assert out.shape == x.shape
    assert jnp.allclose(out, ref, atol=2e-2, rtol=2e-2), "f32 mismatch vs reference"

    # 2) Force the d_ff-blocked accumulator path (nk > 1) used on VMEM-tight chips.
    out_blk = positionwise_ff(x, w1, b1, w2, b2, gamma, beta, max_ff_block=128)
    jax.block_until_ready(out_blk)
    assert jnp.allclose(out_blk, ref, atol=2e-2, rtol=2e-2), "F-tiled mismatch vs reference"

    # 3) Opt-in bf16 matmul fast path on f32 inputs (f32 accumulate + f32 LayerNorm).
    out_fast = positionwise_ff(x, w1, b1, w2, b2, gamma, beta, matmul_dtype=jnp.bfloat16)
    jax.block_until_ready(out_fast)
    assert jnp.allclose(out_fast, ref, atol=1.5e-1, rtol=1.5e-1), \
        "bf16-matmul fast path mismatch vs reference"

    # 4) End-to-end bf16 inputs/weights.
    out_bf = positionwise_ff(
        x.astype(jnp.bfloat16),
        w1.astype(jnp.bfloat16), b1.astype(jnp.bfloat16),
        w2.astype(jnp.bfloat16), b2.astype(jnp.bfloat16),
        gamma, beta)
    jax.block_until_ready(out_bf)
    assert out_bf.dtype == jnp.bfloat16
    assert jnp.allclose(out_bf.astype(jnp.float32), ref, atol=1.5e-1, rtol=1.5e-1), \
        "bf16 mismatch vs reference"

    print("KERNEL_OK")
</pallas_src>

<mosaic_0001>
module attributes {stable_mosaic.version = 11 : i64} {
  func.func @_ff_kernel(%arg0: i32, %arg1: i32, %arg2: memref<24x128xf32, #tpu.memory_space<vmem>>, %arg3: memref<128x384xf32, #tpu.memory_space<vmem>>, %arg4: memref<1x384xf32, #tpu.memory_space<vmem>>, %arg5: memref<384x128xf32, #tpu.memory_space<vmem>>, %arg6: memref<1x128xf32, #tpu.memory_space<vmem>>, %arg7: memref<1x128xf32, #tpu.memory_space<vmem>>, %arg8: memref<1x128xf32, #tpu.memory_space<vmem>>, %arg9: memref<24x128xf32, #tpu.memory_space<vmem>>, %arg10: memref<24x128xf32, #tpu.memory_space<vmem>>) attributes {dimension_semantics = [#tpu.dimension_semantics<parallel>, #tpu.dimension_semantics<arbitrary>], iteration_bounds = array<i64: 2, 1>, scalar_prefetch = 0 : i64, scratch_operands = 1 : i64, tpu.core_type = #tpu.core_type<tc>, window_params = [{transform_indices = @transform_0, window_bounds = array<i64: 24, 128>}, {pipeline_mode = #tpu.pipeline_mode<synchronous>, transform_indices = @transform_1, window_bounds = array<i64: 128, 384>}, {pipeline_mode = #tpu.pipeline_mode<synchronous>, transform_indices = @transform_2, window_bounds = array<i64: 1, 384>}, {pipeline_mode = #tpu.pipeline_mode<synchronous>, transform_indices = @transform_3, window_bounds = array<i64: 384, 128>}, {pipeline_mode = #tpu.pipeline_mode<synchronous>, transform_indices = @transform_4, window_bounds = array<i64: 1, 128>}, {pipeline_mode = #tpu.pipeline_mode<synchronous>, transform_indices = @transform_5, window_bounds = array<i64: 1, 128>}, {pipeline_mode = #tpu.pipeline_mode<synchronous>, transform_indices = @transform_6, window_bounds = array<i64: 1, 128>}, {transform_indices = @transform_7, window_bounds = array<i64: 24, 128>}]} {
    %c0_i32 = arith.constant 0 : i32
    %0 = arith.cmpi eq, %arg1, %c0_i32 : i32
    %1 = arith.extui %0 : i1 to i32
    %c0_i32_0 = arith.constant 0 : i32
    %2 = arith.cmpi ne, %1, %c0_i32_0 : i32
    scf.if %2 {
      %cst_16 = arith.constant 0.000000e+00 : f32
      %19 = vector.broadcast %cst_16 : f32 to vector<24x128xf32>
      %c0_17 = arith.constant 0 : index
      %c0_18 = arith.constant 0 : index
      %20 = vector.load %arg10[%c0_17, %c0_18] : memref<24x128xf32, #tpu.memory_space<vmem>>, vector<24x128xf32>
      tpu.vector_store %arg10[%c0_17, %c0_18], %19 {strides = array<i32>} : memref<24x128xf32, #tpu.memory_space<vmem>>, vector<24x128xf32>,
    } else {
    }
    %c0 = arith.constant 0 : index
    %c0_1 = arith.constant 0 : index
    %3 = vector.load %arg2[%c0, %c0_1] : memref<24x128xf32, #tpu.memory_space<vmem>>, vector<24x128xf32>
    %c0_2 = arith.constant 0 : index
    %c0_3 = arith.constant 0 : index
    %4 = vector.load %arg3[%c0_2, %c0_3] : memref<128x384xf32, #tpu.memory_space<vmem>>, vector<128x384xf32>
    %cst = arith.constant dense<0.000000e+00> : vector<24x384xf32>
    %5 = tpu.matmul %3, %4, %cst {dimension_numbers = #tpu.dot_dimension_numbers<[1], [0], [0], [1], [0, 0, 1, 1], [], []>} : vector<24x128xf32>, vector<128x384xf32>, vector<24x384xf32> -> vector<24x384xf32>
    %c0_4 = arith.constant 0 : index
    %c0_5 = arith.constant 0 : index
    %6 = vector.load %arg4[%c0_4, %c0_5] : memref<1x384xf32, #tpu.memory_space<vmem>>, vector<1x384xf32>
    %7 = vector.broadcast %6 : vector<1x384xf32> to vector<24x384xf32>
    %8 = arith.addf %5, %7 : vector<24x384xf32>
    %cst_6 = arith.constant 0.000000e+00 : f32
    %9 = vector.broadcast %cst_6 : f32 to vector<24x384xf32>
    %10 = arith.maximumf %8, %9 : vector<24x384xf32>
    %c0_7 = arith.constant 0 : index
    %c0_8 = arith.constant 0 : index
    %11 = vector.load %arg5[%c0_7, %c0_8] : memref<384x128xf32, #tpu.memory_space<vmem>>, vector<384x128xf32>
    %c0_9 = arith.constant 0 : index
    %c0_10 = arith.constant 0 : index
    %12 = vector.load %arg10[%c0_9, %c0_10] : memref<24x128xf32, #tpu.memory_space<vmem>>, vector<24x128xf32>
    %cst_11 = arith.constant dense<0.000000e+00> : vector<24x128xf32>
    %13 = tpu.matmul %10, %11, %cst_11 {dimension_numbers = #tpu.dot_dimension_numbers<[1], [0], [0], [1], [0, 0, 1, 1], [], []>} : vector<24x384xf32>, vector<384x128xf32>, vector<24x128xf32> -> vector<24x128xf32>
    %14 = arith.addf %12, %13 : vector<24x128xf32>
    %c0_12 = arith.constant 0 : index
    %c0_13 = arith.constant 0 : index
    %15 = vector.load %arg10[%c0_12, %c0_13] : memref<24x128xf32, #tpu.memory_space<vmem>>, vector<24x128xf32>
    tpu.vector_store %arg10[%c0_12, %c0_13], %14 {strides = array<i32>} : memref<24x128xf32, #tpu.memory_space<vmem>>, vector<24x128xf32>,
    %c0_i32_14 = arith.constant 0 : i32
    %16 = arith.cmpi eq, %arg1, %c0_i32_14 : i32
    %17 = arith.extui %16 : i1 to i32
    %c0_i32_15 = arith.constant 0 : i32
    %18 = arith.cmpi ne, %17, %c0_i32_15 : i32
    scf.if %18 {
      %c0_16 = arith.constant 0 : index
      %c0_17 = arith.constant 0 : index
      %19 = vector.load %arg10[%c0_16, %c0_17] : memref<24x128xf32, #tpu.memory_space<vmem>>, vector<24x128xf32>
      %c0_18 = arith.constant 0 : index
      %c0_19 = arith.constant 0 : index
      %20 = vector.load %arg6[%c0_18, %c0_19] : memref<1x128xf32, #tpu.memory_space<vmem>>, vector<1x128xf32>
      %21 = vector.broadcast %20 : vector<1x128xf32> to vector<24x128xf32>
      %22 = arith.addf %19, %21 : vector<24x128xf32>
      %23 = arith.addf %3, %22 : vector<24x128xf32>
      %cst_20 = arith.constant dense<0.000000e+00> : vector<24xf32>
      %24 = vector.multi_reduction <add>, %23, %cst_20 [1] : vector<24x128xf32> to vector<24xf32>
      %25 = vector.shape_cast %24 : vector<24xf32> to vector<24x1xf32>
      %cst_21 = arith.constant 0.00833333377 : f32
      %26 = vector.broadcast %cst_21 : f32 to vector<24x1xf32>
      %27 = arith.mulf %25, %26 : vector<24x1xf32>
      %28 = arith.mulf %23, %23 : vector<24x128xf32>
      %cst_22 = arith.constant dense<0.000000e+00> : vector<24xf32>
      %29 = vector.multi_reduction <add>, %28, %cst_22 [1] : vector<24x128xf32> to vector<24xf32>
      %30 = vector.shape_cast %29 : vector<24xf32> to vector<24x1xf32>
      %cst_23 = arith.constant 0.00833333377 : f32
      %31 = vector.broadcast %cst_23 : f32 to vector<24x1xf32>
      %32 = arith.mulf %30, %31 : vector<24x1xf32>
      %33 = arith.mulf %27, %27 : vector<24x1xf32>
      %34 = arith.subf %32, %33 : vector<24x1xf32>
      %35 = vector.broadcast %27 : vector<24x1xf32> to vector<24x128xf32>
      %36 = arith.subf %23, %35 : vector<24x128xf32>
      %cst_24 = arith.constant 9.99999974E-6 : f32
      %37 = vector.broadcast %cst_24 : f32 to vector<24x1xf32>
      %38 = arith.addf %34, %37 : vector<24x1xf32>
      %39 = math.rsqrt %38 : vector<24x1xf32>
      %40 = vector.broadcast %39 : vector<24x1xf32> to vector<24x128xf32>
      %41 = arith.mulf %36, %40 : vector<24x128xf32>
      %c0_25 = arith.constant 0 : index
      %c0_26 = arith.constant 0 : index
      %42 = vector.load %arg7[%c0_25, %c0_26] : memref<1x128xf32, #tpu.memory_space<vmem>>, vector<1x128xf32>
      %43 = vector.broadcast %42 : vector<1x128xf32> to vector<24x128xf32>
      %44 = arith.mulf %41, %43 : vector<24x128xf32>
      %c0_27 = arith.constant 0 : index
      %c0_28 = arith.constant 0 : index
      %45 = vector.load %arg8[%c0_27, %c0_28] : memref<1x128xf32, #tpu.memory_space<vmem>>, vector<1x128xf32>
      %46 = vector.broadcast %45 : vector<1x128xf32> to vector<24x128xf32>
      %47 = arith.addf %44, %46 : vector<24x128xf32>
      %c0_29 = arith.constant 0 : index
      %c0_30 = arith.constant 0 : index
      %48 = vector.load %arg9[%c0_29, %c0_30] : memref<24x128xf32, #tpu.memory_space<vmem>>, vector<24x128xf32>
      tpu.vector_store %arg9[%c0_29, %c0_30], %47 {strides = array<i32>} : memref<24x128xf32, #tpu.memory_space<vmem>>, vector<24x128xf32>,
    } else {
    }
    return
  }
  func.func @transform_0(%arg0: i32, %arg1: i32) -> (i32, i32) {
    %c0_i32 = arith.constant 0 : i32
    %c0_i32_0 = arith.constant 0 : i32
    return %arg0, %c0_i32 : i32, i32
  }
  func.func @transform_1(%arg0: i32, %arg1: i32) -> (i32, i32) {
    %c0_i32 = arith.constant 0 : i32
    %c0_i32_0 = arith.constant 0 : i32
    return %c0_i32, %arg1 : i32, i32
  }
  func.func @transform_2(%arg0: i32, %arg1: i32) -> (i32, i32) {
    %c0_i32 = arith.constant 0 : i32
    %c0_i32_0 = arith.constant 0 : i32
    return %c0_i32, %arg1 : i32, i32
  }
  func.func @transform_3(%arg0: i32, %arg1: i32) -> (i32, i32) {
    %c0_i32 = arith.constant 0 : i32
    %c0_i32_0 = arith.constant 0 : i32
    return %arg1, %c0_i32 : i32, i32
  }
  func.func @transform_4(%arg0: i32, %arg1: i32) -> (i32, i32) {
    %c0_i32 = arith.constant 0 : i32
    %c0_i32_0 = arith.constant 0 : i32
    %c0_i32_1 = arith.constant 0 : i32
    return %c0_i32, %c0_i32_0 : i32, i32
  }
  func.func @transform_5(%arg0: i32, %arg1: i32) -> (i32, i32) {
    %c0_i32 = arith.constant 0 : i32
    %c0_i32_0 = arith.constant 0 : i32
    %c0_i32_1 = arith.constant 0 : i32
    return %c0_i32, %c0_i32_0 : i32, i32
  }
  func.func @transform_6(%arg0: i32, %arg1: i32) -> (i32, i32) {
    %c0_i32 = arith.constant 0 : i32
    %c0_i32_0 = arith.constant 0 : i32
    %c0_i32_1 = arith.constant 0 : i32
    return %c0_i32, %c0_i32_0 : i32, i32
  }
  func.func @transform_7(%arg0: i32, %arg1: i32) -> (i32, i32) {
    %c0_i32 = arith.constant 0 : i32
    %c0_i32_0 = arith.constant 0 : i32
    return %arg0, %c0_i32 : i32, i32
  }
}

</mosaic_0001>

<bundles_post_ra>
// kernel: tpu_custom_call.1
= control target key start
LH: loop header
LB: loop body
LE: loop exit
PB: predicated region body
PF: predicated region fallthrough
CT: control target
= control target key end

     0   :  { %12 = vsyncpa [#allocation4], 0  ;;  %s1997_s0 = inlined_call_operand.hbm [shape: f32[48,128], index: 0, kind: input, shape index: {}]   ;;  %s1998_s1 = inlined_call_operand.hbm [shape: f32[128,384], index: 1, kind: input, shape index: {}]   ;;  %s1999_s2 = inlined_call_operand.vmem [shape: f32[1,384], index: 2, kind: input, shape index: {}]   ;;  %s2000_s3 = inlined_call_operand.hbm [shape: f32[384,128], index: 3, kind: input, shape index: {}]   ;;  %s2001_s4 = inlined_call_operand.vmem [shape: f32[1,128], index: 4, kind: input, shape index: {}]   ;;  %s2002_s5 = inlined_call_operand.vmem [shape: f32[1,128], index: 5, kind: input, shape index: {}]   ;;  %s2003_s6 = inlined_call_operand.vmem [shape: f32[1,128], index: 6, kind: input, shape index: {}]   ;;  %s2004_s7 = inlined_call_operand.hbm [shape: f32[48,128], index: 7, kind: output, shape index: {}]  }
   0x1   :  { %14 = vsyncpa [#allocation4 + $0x1], 0 }
   0x2   :  { %15 = vsyncpa [#allocation7], 0 }
   0x3   :  { %16 = vsyncpa [#allocation5], 0 }
   0x4   :  { %18 = vsyncpa [#allocation5 + $0x1], 0  ;;  %s1671_s24 = smov 0   ;;  %s1673_s25 = smov 0  }
   0x5   :  { %s1675_s26 = smov 0   ;;  %s1677_s27 = smov 0  }
   0x6   :  { %s1679_s28 = smov 0   ;;  %s1681_s29 = smov 0  }
   0x7 LB: > { %2013 = sst [smem:[#allocation13_spill]] %s1596_s24  ;;  %s1052_s30 = sadd.s32 4294967295, %s1616_s29   ;;  %s1616_s29 = sphi %s1681_s29, %s24_s29   ;;  %s1612_s28 = sphi %s1679_s28, %s2036_s28   ;;  %s1608_s27 = sphi %s1677_s27, %s2035_s27   ;;  %s1604_s26 = sphi %s1675_s26, %s2034_s26   ;;  %s1600_s25 = sphi %s1673_s25, %s2033_s25   ;;  %s1596_s24 = sphi %s1671_s24, %s2032_s24  }
   0x8   : > { %s1053_s8 = sadd.s32 4294967294, %s1616_s29   ;;  %p56_p0 = scmp.ne.s32.totalorder %s1600_s25, %s1596_s24 }
   0x9   : > { %p1705_p1 = scmp.eq.s32.totalorder %s1052_s30, 0  ;;  %p1709_p2 = scmp.eq.s32.totalorder %s1052_s30, 1 }
   0xa   : > { %p227_p3 = scmp.eq.s32.totalorder %s1053_s8, 1  ;;  %p1054_p5 = scmp.ge.s32.totalorder %s1616_s29, 1 }
   0xb   : > { %s2014_s9 = scalar_select %p1705_p1, 1, 0 }
   0xc   : > { %p1715_p4 = por %p1705_p1, %p56_p0  ;;  %p1720_p6 = por %p227_p3, %p56_p0 }
   0xd   : > { %p234_p7 = scmp.lt.s32.totalorder %s1616_s29, 3  ;;  %s1618_s14 = smov [#allocation6]  }
   0xe   : > { %s2016_s11 = scalar_select %p1715_p4, 1, 0 }
   0xf   : > { %s2017_s12 = scalar_select %p1720_p6, 1, 0 }
  0x10   : > { %p1725_p8 = pnand %p1054_p5, %p234_p7  ;;  %s249_s15 = sshll.u32 %s1618_s14, 4  ;;  %s1729_s15 = int_to_ptr.vmem [resolvable:$true] %s249_s15 }
  0x11   : > { %2018 = sst [smem:[#allocation14_spill]] %s2017_s12  ;;  %s1619_s17 = smov [#allocation8]  }
  0x12   : > { %p1358_p9 = pneg %p1725_p8  ;;  %s273_s18 = sshll.u32 %s1619_s17, 4  ;;  %s1740_s18 = int_to_ptr.vmem [resolvable:$true] %s273_s18 }
  0x13   : > { %s1444_s21 = scalar_lea.hbm %s1998_s1, 6144 }
  0x14   : > { %p1736_p11 = pnand %p1358_p9, %p1705_p1  ;;  %p1445_p12 = scmp.ne.s32.totalorder %s1998_s1, %s1444_s21 }
  0x15   : > { %p1451_p5 = scmp.lt.u32.totalorder %s1444_s21, %s1998_s1 }
  0x16   : > { %p1446_p13 = pneg %p1736_p11 }
  0x18   : > { %p1447_p0 = pnand %p1446_p13, %p1445_p12 }
  0x1a   : > { %p1448_p3 = pneg %p1447_p0 }
  0x1c   : > { %p1453_p7 = pnand %p1451_p5, %p1448_p3 }
  0x1e   : > { %1456 = shalt.err (!%p1453_p7)
}
  0x1f   : > { %s1457_s14 = scalar_lea.vmem %s1729_s15, 6144  ;;  %p1465_p1 = scmp.lt.s32.totalorder %s1729_s15, %s1729_s15 }
  0x20   : > { %p1458_p9 = scmp.ne.s32.totalorder %s1729_s15, %s1457_s14  ;;  %p1466_p12 = scmp.lt.s32.totalorder %s1457_s14, %s1457_s14 }
  0x22   : > { %p1460_p10 = pnand %p1458_p9, %p1446_p13  ;;  %p1467_p0 = por %p1466_p12, %p1465_p1 }
  0x24   : > { %p1461_p6 = pneg %p1460_p10 }
  0x26   : > { %p1468_p4 = pnand %p1467_p0, %p1461_p6 }
  0x28   : > { %1471 = shalt.err (!%p1468_p4)
}
  0x29   : > { %s1620_s17 = smov 384   ;;  %s1621_s19 = smov 24  }
  0x2a   : > { %1361 = dma.hbm_to_vmem [thread:$0]  (!%p1736_p11), %s1998_s1, 6144, %s1729_s15, [#allocation7], %s1620_s17, %s1620_s17, %s1621_s19  }
  0x2b   : > { %s1472_s30 = scalar_lea.hbm %s2000_s3, 6144 }
  0x2c   : > { %p1473_p1 = scmp.ne.s32.totalorder %s2000_s3, %s1472_s30  ;;  %p1479_p10 = scmp.lt.u32.totalorder %s1472_s30, %s2000_s3 }
  0x2e   : > { %p1475_p4 = pnand %p1473_p1, %p1446_p13 }
  0x30   : > { %p1476_p6 = pneg %p1475_p4 }
  0x32   : > { %p1481_p3 = pnand %p1479_p10, %p1476_p6 }
  0x34   : > { %1484 = shalt.err (!%p1481_p3)
}
  0x35   : > { %s1485_s15 = scalar_lea.vmem %s1740_s18, 6144  ;;  %p1493_p12 = scmp.lt.s32.totalorder %s1740_s18, %s1740_s18 }
  0x36   : > { %p1486_p5 = scmp.ne.s32.totalorder %s1740_s18, %s1485_s15  ;;  %p1494_p0 = scmp.lt.s32.totalorder %s1485_s15, %s1485_s15 }
  0x38   : > { %p1488_p7 = pnand %p1486_p5, %p1446_p13  ;;  %p1495_p1 = por %p1494_p0, %p1493_p12 }
  0x3a   : > { %p1489_p9 = pneg %p1488_p7 }
  0x3c   : > { %p1496_p4 = pnand %p1495_p1, %p1489_p9 }
  0x3e   : > { %1499 = shalt.err (!%p1496_p4)
}
  0x3f   : > { %s2010_s24 = smov 128   ;;  %s2011_s12 = smov 8  }
  0x40   : > { %1364 = dma.hbm_to_vmem [thread:$0]  (!%p1736_p11), %s2000_s3, 6144, %s1740_s18, [#allocation7], %s2010_s24, %s2010_s24, %s2011_s12  }
  0x41   : > { %s36_s20 = sadd.s32 1, %s1612_s28  ;;  %s43_s21 = sadd.s32 1, %s1604_s26 }
  0x42   : > { %p38_p13 = scmp.ge.s32.totalorder %s36_s20, 2  ;;  %p50_p6 = scmp.ne.s32.totalorder %s1604_s26, %s1600_s25 }
  0x43   : > { %p51_p10 = scmp.eq.s32.totalorder %s1616_s29, 0  ;;  %p1375_p3 = scmp.lt.s32.totalorder %s1616_s29, 2 }
  0x44   : > { %s2038_s20 = smov (%p38_p13, %s36_s20), 0  ;;  %p1807_p7 = por %p1709_p2, %p50_p6 }
  0x45   : > { %p52_p5 = por %p51_p10, %p50_p6  ;;  %s40_s22 = ssub.s32 %s1612_s28, %s2038_s20 }
  0x46   : > { %s2021_s16 = scalar_select %p1807_p7, 1, 0 }
  0x47   : > { %s296_s23 = sand.u32 1, %s1604_s26   ;;  %p41_p9 = scmp.eq.s32.totalorder %s40_s22, 0 }
  0x48   : > { %s1344_s18 = smul.u32 24, %s296_s23  ;;  %p1814_p11 = pnand %p1375_p3, %p52_p5 }
  0x49   : > { %s1819_s8 = scalar_select %p41_p9, %s1604_s26, %s43_s21  }
  0x4a   : > { %s1069_s14 = smul.u32 384, %s1612_s28  ;;  %s300_s15 = scalar_lea.vmem [#allocation3], %s1344_s18 }
  0x4b   : > { %s307_s17 = sshll.u32 %s300_s15, 4  ;;  %s1829_s22 = scalar_lea.sflag [#allocation4], %s296_s23  ;;  %s1827_s17 = int_to_ptr.vmem [resolvable:$true] %s307_s17 }
  0x4c   : > { %s1825_s24 = scalar_lea.hbm %s1997_s0, %s1069_s14  ;;  %p1502_p12 = pneg %p1814_p11 }
  0x4d   : > { %s1500_s12 = scalar_lea.hbm %s1825_s24, 384  ;;  %s1505_s14 = scalar_lea.hbm %s1997_s0, 768 }
  0x4e   : > { %p1501_p2 = scmp.ne.s32.totalorder %s1825_s24, %s1500_s12  ;;  %p1506_p4 = scmp.lt.u32.totalorder %s1825_s24, %s1997_s0 }
  0x4f   : > { %p1507_p13 = scmp.lt.u32.totalorder %s1505_s14, %s1500_s12  ;;  %p1509_p10 = scmp.lt.u32.totalorder %s1500_s12, %s1825_s24 }
  0x50   : > { %p1503_p0 = pnand %p1502_p12, %p1501_p2 }
  0x51   : > { %p1508_p6 = por %p1507_p13, %p1506_p4 }
  0x52   : > { %p1504_p1 = pneg %p1503_p0 }
  0x53   : > { %p1510_p3 = por %p1509_p10, %p1508_p6 }
  0x55   : > { %p1511_p5 = pnand %p1510_p3, %p1504_p1 }
  0x57   : > { %1514 = shalt.err (!%p1511_p5)
}
  0x58   : > { %s1515_s23 = scalar_lea.vmem %s1827_s17, 384  ;;  %s1624_s19 = smov [#allocation3]  }
  0x59   : > { %p1516_p9 = scmp.ne.s32.totalorder %s1827_s17, %s1515_s23  ;;  %s1520_s21 = sshll.u32 %s1624_s19, 4  ;;  %s1521_s21 = int_to_ptr.vmem [resolvable:$false] %s1520_s21 }
  0x5a   : > { %s1522_s18 = scalar_lea.vmem %s1521_s21, 768  ;;  %p1523_p7 = scmp.lt.s32.totalorder %s1827_s17, %s1521_s21 }
  0x5b   : > { %p1518_p2 = pnand %p1516_p9, %p1502_p12  ;;  %p1524_p4 = scmp.lt.s32.totalorder %s1522_s18, %s1515_s23 }
  0x5d   : > { %p1519_p0 = pneg %p1518_p2  ;;  %p1525_p13 = por %p1524_p4, %p1523_p7 }
  0x5f   : > { %p1526_p6 = pnand %p1525_p13, %p1519_p0 }
  0x61   : > { %1529 = shalt.err (!%p1526_p6)
}
  0x62   : > { %s2023_s12 = smov 8   ;;  %s2024_s14 = smov 128  }
  0x63   : > { %1368 = dma.hbm_to_vmem [thread:$0]  (!%p1814_p11), %s1825_s24, 384, %s1827_s17, %s1829_s22, %s2024_s14, %s2024_s14, %s2023_s12  }
  0x64   : > { %319 = sbr.rel (%p1725_p8) target bundleno = 778 (0x30a), region = 48  ;;  %s1863_s15 = sand.u32 (!%p1725_p8), 1, %s1600_s25  }
  0x65   : > { %s1345_s10 = smul.u32 (!%p1725_p8), 24, %s1863_s15  ;;  %s322_s23 = scalar_lea.sflag (!%p1725_p8), [#allocation4], %s1863_s15 }
  0x66   : > { %p2025_p7 = scmp.ne.s32.totalorder (!%p1725_p8), %s2016_s11, 0 }
  0x67   : > { %s1869_s30 = scalar_lea.vmem (!%p1725_p8), [#allocation3], %s1345_s10 }
  0x6b   : > { %1583 = dma.done.wait (%p2025_p7), %s322_s23, 384  }
  0x6c   : > { %1585 = vsyncadd (%p2025_p7), %s322_s23, 4294966912  ;;  %p2026_p11 = scmp.ne.s32.totalorder %s2014_s9, 0 }
  0x6e   : > { %1587 = dma.done.wait (%p2026_p11), [#allocation7], 12288  }
  0x6f   : > { %1589 = vsyncadd (%p2026_p11), [#allocation7], 4294955008  ;;  %v1625_v0 = vmov 0.0|0.0   ;;  %v1626_v1 = vmov 0.0   ;;  %vm1627_vm0 = vmmov 0   ;;  %v388_v2 = vld [vmem:[#allocation6 + $0x8] sm:$0xff] }
  0x70   : > { %1264 = vmatprep.subr.bf16.mxu1 %v1625_v0  ;;  %516 = vmatprep.mubr.f32.mxu0 %v1626_v1  ;;  %v391_v3 = vld [vmem:[#allocation6 + $0x20] sm:$0xff]  ;;  %v390_v6 = vld [vmem:[#allocation6 + $0x18] sm:$0xff]  ;;  %v397_v8 = vld [vmem:[#allocation6 + $0x50] sm:$0xff]  ;;  %s367_s18 = scalar_lea.vmem [#allocation9], %s1345_s10  ;;  %s1070_s12 = smul.u32 384, %s1608_s27 }
  0x71   : > { %1182 = vmatprep.mubr.msk.f32.mxu1 %vm1627_vm0, %v1626_v1  ;;  %v387_v4 = vld [vmem:[#allocation6] sm:$0xff]  ;;  %v1232_v5 = vpack.c.bf16 %v391_v3, %v388_v2  ;;  %v394_v7 = vld [vmem:[#allocation6 + $0x38] sm:$0xff]  ;;  %v393_v11 = vld [vmem:[#allocation6 + $0x30] sm:$0xff]  ;;  %s936_s14 = sshll.u32 %s367_s18, 4  ;;  %s923_s10 = scalar_lea.sflag [#allocation5], %s1863_s15  ;;  %s1948_s14 = int_to_ptr.vmem [resolvable:$true] %s936_s14 }
  0x72   : > { %v1234_v9 = vpack.c.bf16 %v390_v6, %v387_v4  ;;  %v1236_v10 = vpack.c.bf16 %v397_v8, %v394_v7  ;;  %v396_v12 = vld [vmem:[#allocation6 + $0x48] sm:$0xff]  ;;  %v389_v13 = vld [vmem:[#allocation6 + $0x10] sm:$0xff]  ;;  %v403_v16 = vld [vmem:[#allocation6 + $0x80] sm:$0xff]  ;;  %s1946_s9 = scalar_lea.hbm %s2004_s7, %s1070_s12  ;;  %s1530_s11 = scalar_lea.vmem %s1948_s14, 384 }
  0x73   : > { %1233 = vmatprep.subr.bf16.mxu0 %v1232_v5  ;;  %v392_v14 = vld [vmem:[#allocation6 + $0x28] sm:$0xff]  ;;  %v1238_v17 = vpack.c.bf16 %v396_v12, %v393_v11  ;;  %v395_v19 = vld [vmem:[#allocation6 + $0x40] sm:$0xff]  ;;  %v402_v22 = vld [vmem:[#allocation6 + $0x78] sm:$0xff]  ;;  %p1531_p8 = scmp.ne.s32.totalorder %s1948_s14, %s1530_s11  ;;  %p2027_p12 = scmp.ne.s32.totalorder %s2021_s16, 0 }
  0x74   : > { %v400_v15 = vld [vmem:[#allocation6 + $0x68] sm:$0xff]  ;;  %1235 = vmatpush1.bf16.msra.mxu0 %v1234_v9  ;;  %v1265_v18 = vpack.c.bf16 %v392_v14, %v389_v13  ;;  %v399_v21 = vld [vmem:[#allocation6 + $0x60] sm:$0xff]  ;;  %v398_v23 = vld [vmem:[#allocation6 + $0x58] sm:$0xff]  ;;  %s1628_s27 = smov [#allocation9]  }
  0x75   : > { %1237 = vmatprep.subr.bf16.mxu0 %v1236_v10  ;;  %v1240_v20 = vpack.c.bf16 %v403_v16, %v400_v15  ;;  %v1268_v24 = vpack.c.bf16 %v398_v23, %v395_v19  ;;  %v406_v25 = vld [vmem:[#allocation6 + $0x98] sm:$0xff]  ;;  %v409_v26 = vld [vmem:[#allocation6 + $0xb0] sm:$0xff]  ;;  %v404_v28 = vld [vmem:[#allocation6 + $0x88] sm:$0xff]  ;;  %v1242_v29 = vpack.c.bf16 %v402_v22, %v399_v21  ;;  %p1532_p1 = pnand %p1531_p8, %p2027_p12  ;;  %s1534_s13 = sshll.u32 %s1628_s27, 4  ;;  %s1535_s13 = int_to_ptr.vmem [resolvable:$false] %s1534_s13 }
  0x76   : > { %1266 = vmatpush3.bf16.msra.mxu1 %v1265_v18  ;;  %v401_v27 = vld [vmem:[#allocation6 + $0x70] sm:$0xff]  ;;  %v1244_v30 = vpack.c.bf16 %v409_v26, %v406_v25  ;;  %v408_v32 = vld [vmem:[#allocation6 + $0xa8] sm:$0xff]  ;;  %v415_v35 = vld [vmem:[#allocation6 + $0xe0] sm:$0xff]  ;;  %s1536_s24 = scalar_lea.vmem %s1535_s13, 768  ;;  %p1537_p3 = scmp.lt.s32.totalorder %s1948_s14, %s1535_s13 }
  0x77   : > { %1267 = vmatprep.subr.bf16.mxu1 %v1625_v0  ;;  %v405_v31 = vld [vmem:[#allocation6 + $0x90] sm:$0xff]  ;;  %v1271_v33 = vpack.c.bf16 %v404_v28, %v401_v27  ;;  %v412_v34 = vld [vmem:[#allocation6 + $0xc8] sm:$0xff]  ;;  %v407_v36 = vld [vmem:[#allocation6 + $0xa0] sm:$0xff]  ;;  %p1533_p10 = pneg %p1532_p1  ;;  %p1538_p5 = scmp.lt.s32.totalorder %s1536_s24, %s1530_s11 }
  0x78   : > { %1239 = vmatpush1.bf16.msra.mxu0 %v1238_v17  ;;  %v410_v37 = vld [vmem:[#allocation6 + $0xb8] sm:$0xff]  ;;  %v1246_v38 = vpack.c.bf16 %v408_v32, %v405_v31  ;;  %v1248_v39 = vpack.c.bf16 %v415_v35, %v412_v34  ;;  %v411_v40 = vld [vmem:[#allocation6 + $0xc0] sm:$0xff]  ;;  %v421_v44 = vld [vmem:[#allocation6 + $0x110] sm:$0xff] }
  0x79   : > { %1241 = vmatprep.subr.bf16.mxu0 %v1240_v20  ;;  %v414_v41 = vld [vmem:[#allocation6 + $0xd8] sm:$0xff]  ;;  %v1274_v42 = vpack.c.bf16 %v410_v37, %v407_v36  ;;  %v413_v45 = vld [vmem:[#allocation6 + $0xd0] sm:$0xff]  ;;  %v416_v46 = vld [vmem:[#allocation6 + $0xe8] sm:$0xff]  ;;  %p1539_p9 = por %p1538_p5, %p1537_p3 }
  0x7a   : > { %1269 = vmatpush3.bf16.msra.mxu1 %v1268_v24  ;;  %v418_v43 = vld [vmem:[#allocation6 + $0xf8] sm:$0xff]  ;;  %v1250_v47 = vpack.c.bf16 %v414_v41, %v411_v40  ;;  %v417_v49 = vld [vmem:[#allocation6 + $0xf0] sm:$0xff]  ;;  %v420_v50 = vld [vmem:[#allocation6 + $0x108] sm:$0xff]  ;;  %v1277_v51 = vpack.c.bf16 %v416_v46, %v413_v45 }
  0x7b   : > { %1270 = vmatprep.subr.bf16.mxu1 %v1625_v0  ;;  %v1252_v48 = vpack.c.bf16 %v421_v44, %v418_v43  ;;  %v424_v52 = vld [vmem:[#allocation6 + $0x128] sm:$0xff]  ;;  %v427_v53 = vld [vmem:[#allocation6 + $0x140] sm:$0xff]  ;;  %v422_v55 = vld [vmem:[#allocation6 + $0x118] sm:$0xff]  ;;  %v1254_v56 = vpack.c.bf16 %v420_v50, %v417_v49  ;;  %p1540_p2 = pnand %p1539_p9, %p1533_p10 }
  0x7c   : > { %1243 = vmatpush1.bf16.msra.mxu0 %v1242_v29  ;;  %v419_v54 = vld [vmem:[#allocation6 + $0x100] sm:$0xff]  ;;  %v1256_v57 = vpack.c.bf16 %v427_v53, %v424_v52  ;;  %v426_v59 = vld [vmem:[#allocation6 + $0x138] sm:$0xff]  ;;  %v433_v62 = vld [vmem:[#allocation6 + $0x170] sm:$0xff] }
  0x7d   : > { %1245 = vmatprep.subr.bf16.mxu0 %v1244_v30  ;;  %v423_v58 = vld [vmem:[#allocation6 + $0x120] sm:$0xff]  ;;  %v1280_v60 = vpack.c.bf16 %v422_v55, %v419_v54  ;;  %v430_v61 = vld [vmem:[#allocation6 + $0x158] sm:$0xff]  ;;  %v425_v63 = vld [vmem:[#allocation6 + $0x130] sm:$0xff] }
  0x7e   : > { %1272 = vmatpush3.bf16.msra.mxu1 %v1271_v33  ;;  %v428_v2 = vld [vmem:[#allocation6 + $0x148] sm:$0xff]  ;;  %v1258_v3 = vpack.c.bf16 %v426_v59, %v423_v58  ;;  %v1260_v4 = vpack.c.bf16 %v433_v62, %v430_v61  ;;  %v429_v5 = vld [vmem:[#allocation6 + $0x150] sm:$0xff]  ;;  %v640_v8 = vld [vmem:[#allocation8 + $0x80] sm:$0xff] }
  0x7f   : > { %1273 = vmatprep.subr.bf16.mxu1 %v1625_v0  ;;  %v432_v6 = vld [vmem:[#allocation6 + $0x168] sm:$0xff]  ;;  %v1283_v7 = vpack.c.bf16 %v428_v2, %v425_v63  ;;  %v431_v10 = vld [vmem:[#allocation6 + $0x160] sm:$0xff]  ;;  %v434_v11 = vld [vmem:[#allocation6 + $0x178] sm:$0xff] }
  0x80   : > { %1247 = vmatpush1.bf16.msra.mxu0 %v1246_v38  ;;  %v641_v9 = vld [vmem:[#allocation8 + $0x88] sm:$0xff]  ;;  %v1262_v12 = vpack.c.bf16 %v432_v6, %v429_v5  ;;  %v624_v14 = vld [vmem:[#allocation8] sm:$0xff]  ;;  %v1286_v16 = vpack.c.bf16 %v434_v11, %v431_v10  ;;  %v642_v17 = vld [vmem:[#allocation8 + $0x90] sm:$0xff] }
  0x81   : > { %1249 = vmatprep.subr.bf16.mxu0 %v1248_v39  ;;  %v1288_v13 = vpack.c.bf16 %v641_v9, %v640_v8  ;;  %v625_v15 = vld [vmem:[#allocation8 + $0x8] sm:$0xff]  ;;  %v643_v18 = vld [vmem:[#allocation8 + $0x98] sm:$0xff]  ;;  %v656_v19 = vld [vmem:[#allocation8 + $0x100] sm:$0xff] }
  0x82   : > { %1275 = vmatpush3.bf16.msra.mxu1 %v1274_v42  ;;  %v657_v20 = vld [vmem:[#allocation8 + $0x108] sm:$0xff]  ;;  %v1290_v22 = vpack.c.bf16 %v625_v15, %v624_v14  ;;  %v1292_v23 = vpack.c.bf16 %v643_v18, %v642_v17  ;;  %v626_v24 = vld [vmem:[#allocation8 + $0x10] sm:$0xff]  ;;  %v627_v25 = vld [vmem:[#allocation8 + $0x18] sm:$0xff] }
  0x83   : > { %1276 = vmatprep.subr.bf16.mxu1 %v1625_v0  ;;  %v1891_v21 = vld [vmem:[%s1869_s30] sm:$0xff]  ;;  %v1321_v26 = vpack.c.bf16 %v657_v20, %v656_v19  ;;  %v644_v27 = vld [vmem:[#allocation8 + $0xa0] sm:$0xff]  ;;  %v659_v30 = vld [vmem:[#allocation8 + $0x118] sm:$0xff]  ;;  %v1294_v32 = vpack.c.bf16 %v627_v25, %v626_v24 }
  0x84   : > { %1251 = vmatpush1.bf16.msra.mxu0 %v1250_v47  ;;  %v645_v28 = vld [vmem:[#allocation8 + $0xa8] sm:$0xff]  ;;  %v658_v29 = vld [vmem:[#allocation8 + $0x110] sm:$0xff]  ;;  %v628_v34 = vld [vmem:[#allocation8 + $0x20] sm:$0xff] }
  0x85   : > { %1253 = vmatprep.subr.bf16.mxu0 %v1252_v48  ;;  %v1897_v31 = vld [vmem:[%s1869_s30 + $0x8] sm:$0xff]  ;;  %v1296_v33 = vpack.c.bf16 %v645_v28, %v644_v27  ;;  %v629_v35 = vld [vmem:[#allocation8 + $0x28] sm:$0xff]  ;;  %v1324_v36 = vpack.c.bf16 %v659_v30, %v658_v29  ;;  %v660_v39 = vld [vmem:[#allocation8 + $0x120] sm:$0xff] }
  0x86   : > { %1278 = vmatpush3.bf16.msra.mxu1 %v1277_v51  ;;  %v646_v37 = vld [vmem:[#allocation8 + $0xb0] sm:$0xff]  ;;  %v647_v38 = vld [vmem:[#allocation8 + $0xb8] sm:$0xff]  ;;  %v661_v40 = vld [vmem:[#allocation8 + $0x128] sm:$0xff]  ;;  %v1298_v42 = vpack.c.bf16 %v629_v35, %v628_v34 }
  0x87   : > { %1279 = vmatprep.subr.bf16.mxu1 %v1625_v0  ;;  %v1906_v41 = vld [vmem:[%s1869_s30 + $0x10] sm:$0xff]  ;;  %v1300_v43 = vpack.c.bf16 %v647_v38, %v646_v37  ;;  %v630_v44 = vld [vmem:[#allocation8 + $0x30] sm:$0xff]  ;;  %v1327_v46 = vpack.c.bf16 %v661_v40, %v660_v39  ;;  %v649_v48 = vld [vmem:[#allocation8 + $0xc8] sm:$0xff] }
  0x88   : > { %1255 = vmatpush1.bf16.msra.mxu0 %v1254_v56  ;;  %v631_v45 = vld [vmem:[#allocation8 + $0x38] sm:$0xff]  ;;  %v648_v47 = vld [vmem:[#allocation8 + $0xc0] sm:$0xff]  ;;  %v662_v49 = vld [vmem:[#allocation8 + $0x130] sm:$0xff] }
  0x89   : > { %1257 = vmatprep.subr.bf16.mxu0 %v1256_v57  ;;  %v663_v50 = vld [vmem:[#allocation8 + $0x138] sm:$0xff]  ;;  %v1302_v51 = vpack.c.bf16 %v631_v45, %v630_v44  ;;  %v1304_v52 = vpack.c.bf16 %v649_v48, %v648_v47  ;;  %v632_v53 = vld [vmem:[#allocation8 + $0x40] sm:$0xff]  ;;  %v633_v54 = vld [vmem:[#allocation8 + $0x48] sm:$0xff] }
  0x8a   : > { %1281 = vmatpush3.bf16.msra.mxu1 %v1280_v60  ;;  %v1330_v55 = vpack.c.bf16 %v663_v50, %v662_v49  ;;  %v650_v56 = vld [vmem:[#allocation8 + $0xd0] sm:$0xff]  ;;  %v651_v57 = vld [vmem:[#allocation8 + $0xd8] sm:$0xff]  ;;  %v664_v58 = vld [vmem:[#allocation8 + $0x140] sm:$0xff]  ;;  %v1306_v60 = vpack.c.bf16 %v633_v54, %v632_v53 }
  0x8b   : > { %1282 = vmatprep.subr.bf16.mxu1 %v1625_v0  ;;  %v665_v59 = vld [vmem:[#allocation8 + $0x148] sm:$0xff]  ;;  %v1308_v61 = vpack.c.bf16 %v651_v57, %v650_v56  ;;  %v634_v62 = vld [vmem:[#allocation8 + $0x50] sm:$0xff]  ;;  %v635_v63 = vld [vmem:[#allocation8 + $0x58] sm:$0xff] }
  0x8c   : > { %1259 = vmatpush1.bf16.msra.mxu0 %v1258_v3  ;;  %v1333_v2 = vpack.c.bf16 %v665_v59, %v664_v58  ;;  %v652_v3 = vld [vmem:[#allocation8 + $0xe0] sm:$0xff]  ;;  %v666_v5 = vld [vmem:[#allocation8 + $0x150] sm:$0xff]  ;;  %v667_v6 = vld [vmem:[#allocation8 + $0x158] sm:$0xff] }
  0x8d   : > { %1261 = vmatprep.subr.bf16.mxu0 %v1260_v4  ;;  %v653_v4 = vld [vmem:[#allocation8 + $0xe8] sm:$0xff]  ;;  %v1336_v9 = vpack.c.bf16 %v667_v6, %v666_v5  ;;  %v636_v10 = vld [vmem:[#allocation8 + $0x60] sm:$0xff]  ;;  %v655_v17 = vld [vmem:[#allocation8 + $0xf8] sm:$0xff] }
  0x8e   : > { %1284 = vmatpush3.bf16.msra.mxu1 %v1283_v7  ;;  %v1310_v7 = vpack.c.bf16 %v635_v63, %v634_v62  ;;  %v1312_v8 = vpack.c.bf16 %v653_v4, %v652_v3  ;;  %v637_v11 = vld [vmem:[#allocation8 + $0x68] sm:$0xff]  ;;  %v638_v19 = vld [vmem:[#allocation8 + $0x70] sm:$0xff]  ;;  %v639_v20 = vld [vmem:[#allocation8 + $0x78] sm:$0xff] }
  0x8f   : > { %1285 = vmatprep.subr.bf16.mxu1 %v1625_v0  ;;  %v669_v14 = vld [vmem:[#allocation8 + $0x168] sm:$0xff]  ;;  %v671_v24 = vld [vmem:[#allocation8 + $0x178] sm:$0xff]  ;;  %v435_v29 = vld [vmem:[%s1999_s2] sm:$0x7] }
  0x90   : > { %1263 = vmatpush1.bf16.msra.mxu0 %v1262_v12  ;;  %v1314_v12 = vpack.c.bf16 %v637_v11, %v636_v10 }
  0x91   : > { %1289 = vmatprep.subr.bf16.mxu0 %v1288_v13  ;;  %v668_v13 = vld [vmem:[#allocation8 + $0x160] sm:$0xff] }
  0x92   : > { %1287 = vmatpush3.bf16.msra.mxu1 %v1286_v16  ;;  %v1339_v15 = vpack.c.bf16 %v669_v14, %v668_v13  ;;  %v654_v16 = vld [vmem:[#allocation8 + $0xf0] sm:$0xff] }
  0x93   : > { %517 = vmatmul.mubr.f32.vlgmr.msra.gmra.mrb[0].mxu0 %v1891_v21  ;;  %1320 = vmatprep.subr.bf16.mxu1 %v1625_v0  ;;  %v1316_v18 = vpack.c.bf16 %v655_v17, %v654_v16 }
  0x94   : > { %522 = vmatprep.mubr.f32.mxu0 %v1626_v1  ;;  %1291 = vmatpush3.bf16.msra.mxu0 %v1290_v22  ;;  %v1318_v22 = vpack.c.bf16 %v639_v20, %v638_v19 }
  0x95   : > { %1183 = vmatmul.mubr.f32.vlgmr.msra.gmra.mrb[0].mxu1 %v1891_v21  ;;  %1293 = vmatprep.subr.bf16.mxu0 %v1292_v23  ;;  %v670_v23 = vld [vmem:[#allocation8 + $0x170] sm:$0xff] }
  0x96   : > { %1185 = vmatprep.mubr.msk.f32.mxu1 %vm1627_vm0, %v1626_v1  ;;  %1322 = vmatpush3.bf16.msra.mxu1 %v1321_v26  ;;  %v1342_v25 = vpack.c.bf16 %v671_v24, %v670_v23  ;;  %v437_v26 = vlaneseq }
  0x97   : > { %523 = vmatmul.mubr.f32.gmra.mrb[2].mxu0 %v1897_v31  ;;  %1323 = vmatprep.subr.bf16.mxu1 %v1625_v0 }
  0x98   : > { %528 = vmatprep.mubr.f32.mxu0 %v1626_v1  ;;  %1295 = vmatpush3.bf16.msra.mxu0 %v1294_v32  ;;  %v438_v27 = vshrl.u32 %v437_v26, 7 }
  0x99   : > { %1186 = vmatmul.mubr.f32.gmra.mrb[2].mxu1 %v1897_v31  ;;  %1297 = vmatprep.subr.bf16.mxu0 %v1296_v33 }
  0x9a   : > { %1188 = vmatprep.mubr.msk.f32.mxu1 %vm1627_vm0, %v1626_v1  ;;  %1325 = vmatpush3.bf16.msra.mxu1 %v1324_v36  ;;  %v439_v28 = vsub.s32 0, %v438_v27  ;;  %v443_v30 = vsub.s32 1, %v438_v27  ;;  %v447_v32 = vsub.s32 2, %v438_v27 }
  0x9b   : > { %529 = vmatmul.mubr.f32.gmra.mrb[4].mxu0 %v1906_v41  ;;  %1326 = vmatprep.subr.bf16.mxu1 %v1625_v0 }
  0x9c   : > { %1299 = vmatpush3.bf16.msra.mxu0 %v1298_v42  ;;  %v440_v33 = vrot.slane %v435_v29, %v439_v28  ;;  %v444_v34 = vrot.slane %v435_v29, %v443_v30  ;;  %v448_v35 = vrot.slane %v435_v29, %v447_v32 }
  0x9d   : > { %1189 = vmatmul.mubr.f32.gmra.mrb[4].mxu1 %v1906_v41  ;;  %1301 = vmatprep.subr.bf16.mxu0 %v1300_v43 }
  0x9e   : > { %1328 = vmatpush3.bf16.msra.mxu1 %v1327_v46  ;;  %1223 = vmatprep.mubr.msk.f32.mxu1 %vm1627_vm0, %v1626_v1 }
  0x9f   : > { %1329 = vmatprep.subr.bf16.mxu1 %v1625_v0 }
  0xa0   : > { %1303 = vmatpush3.bf16.msra.mxu0 %v1302_v51 }
  0xa1   : > { %1305 = vmatprep.subr.bf16.mxu0 %v1304_v52 }
  0xa2   : > { %1331 = vmatpush3.bf16.msra.mxu1 %v1330_v55 }
  0xa3   : > { %1332 = vmatprep.subr.bf16.mxu1 %v1625_v0 }
  0xa4   : > { %1307 = vmatpush3.bf16.msra.mxu0 %v1306_v60 }
  0xa5   : > { %1309 = vmatprep.subr.bf16.mxu0 %v1308_v61 }
  0xa6   : > { %1334 = vmatpush3.bf16.msra.mxu1 %v1333_v2 }
  0xa7   : > { %1335 = vmatprep.subr.bf16.mxu1 %v1625_v0 }
  0xa8   : > { %1311 = vmatpush3.bf16.msra.mxu0 %v1310_v7 }
  0xa9   : > { %1313 = vmatprep.subr.bf16.mxu0 %v1312_v8 }
  0xaa   : > { %1337 = vmatpush3.bf16.msra.mxu1 %v1336_v9  ;;  %v1063_v9 = vld [vmem:[%s2001_s4] ss:$0 sm:$0xff] }
  0xab   : > { %1338 = vmatprep.subr.bf16.mxu1 %v1625_v0 }
  0xac   : > { %1315 = vmatpush3.bf16.msra.mxu0 %v1314_v12 }
  0xad   : > { %1317 = vmatprep.subr.bf16.mxu0 %v1316_v18 }
  0xae   : > { %1340 = vmatpush3.bf16.msra.mxu1 %v1339_v15 }
  0xaf   : > { %1341 = vmatprep.subr.bf16.mxu1 %v1625_v0 }
  0xb0   : > { %1319 = vmatpush3.bf16.msra.mxu0 %v1318_v22 }
  0xb2   : > { %1343 = vmatpush3.bf16.msra.mxu1 %v1342_v25 }
 0x166   : > { %v518_v36 = vpop.f32.mrb[0].mxu0 }
 0x167   : > { %v519_v37 = vadd.f32 %v518_v36, %v440_v33  ;;  %v520_v0 = vpop.f32.mrb[1].mxu0 }
 0x168   : > { %v521_v38 = vadd.f32 %v520_v0, %v444_v34  ;;  %v601_v39 = vpop.f32.mrb[0].mxu1 }
 0x169   : > { %v602_v40 = vadd.f32 %v601_v39, %v448_v35  ;;  %v1184_v42 = vpop.f32.mrb[1].mxu1  ;;  %v615_v45 = vmax.f32 %v519_v37, 0.0 }
 0x16a   : > { %v616_v43 = vmax.f32 %v521_v38, 0.0  ;;  %v524_v44 = vpop.f32.mrb[2].mxu0 }
 0x16b   : > { %v525_v46 = vadd.f32 %v524_v44, %v440_v33  ;;  %v617_v47 = vmax.f32 %v602_v40, 0.0  ;;  %v526_v48 = vpop.f32.mrb[3].mxu0 }
 0x16c   : > { %v527_v49 = vadd.f32 %v526_v48, %v444_v34  ;;  %739 = vmatprep.mubr.f32.mxu0 %v616_v43  ;;  %v606_v50 = vpop.f32.mrb[2].mxu1 }
 0x16d   : > { %740 = vmatmul.mubr.f32.vlgmr.msra.gmra.mrb[6].mxu0 %v615_v45  ;;  %v607_v51 = vadd.f32 %v606_v50, %v448_v35  ;;  %v1187_v52 = vpop.f32.mrb[3].mxu1  ;;  %1224 = vmatmul.mubr.f32.vlgmr.msra.gmra.mrb[6].mxu1 %v617_v47  ;;  %v618_v55 = vmax.f32 %v525_v46, 0.0 }
 0x16e   : > { %v619_v53 = vmax.f32 %v527_v49, 0.0  ;;  %v530_v54 = vpop.f32.mrb[4].mxu0  ;;  %1226 = vmatprep.mubr.msk.f32.mxu1 %vm1627_vm0, %v1626_v1 }
 0x16f   : > { %v531_v56 = vadd.f32 %v530_v54, %v440_v33  ;;  %v620_v57 = vmax.f32 %v607_v51, 0.0  ;;  %v532_v58 = vpop.f32.mrb[5].mxu0 }
 0x170   : > { %v533_v59 = vadd.f32 %v532_v58, %v444_v34  ;;  %744 = vmatprep.mubr.f32.mxu0 %v619_v53  ;;  %v611_v60 = vpop.f32.mrb[4].mxu1  ;;  %v1064_v53 = vld [vmem:[%s2002_s5] ss:$0 sm:$0xff] }
 0x171   : > { %745 = vmatmul.mubr.f32.gmra.mrb[8].mxu0 %v618_v55  ;;  %v612_v61 = vadd.f32 %v611_v60, %v448_v35  ;;  %v1190_v62 = vpop.f32.mrb[5].mxu1  ;;  %1227 = vmatmul.mubr.f32.gmra.mrb[8].mxu1 %v620_v57  ;;  %v621_v2 = vmax.f32 %v531_v56, 0.0  ;;  %v1065_v55 = vld [vmem:[%s2003_s6] ss:$0 sm:$0xff] }
 0x172   : > { %v622_v63 = vmax.f32 %v533_v59, 0.0  ;;  %1229 = vmatprep.mubr.msk.f32.mxu1 %vm1627_vm0, %v1626_v1 }
 0x173   : > { %v623_v3 = vmax.f32 %v612_v61, 0.0 }
 0x174   : > { %749 = vmatprep.mubr.f32.mxu0 %v622_v63 }
 0x175   : > { %750 = vmatmul.mubr.f32.gmra.mrb[10].mxu0 %v621_v2  ;;  %1230 = vmatmul.mubr.f32.gmra.mrb[10].mxu1 %v623_v3 }
 0x240   : > { %v1122_v4 = vpop.f32.mrb[6].mxu0  ;;  %v821_v5 = vpop.f32.mrb[6].mxu1 }
 0x241   : > { %v1123_v6 = vpop.f32.mrb[7].mxu0  ;;  %v1225_v7 = vpop.f32.mrb[7].mxu1 }
 0x242   : > { %v1124_v8 = vadd.f32 %v1123_v6, %v1122_v4 }
 0x244   : > { %v822_v10 = vadd.f32 %v1124_v8, %v821_v5  ;;  %v1125_v11 = vpop.f32.mrb[8].mxu0  ;;  %v826_v12 = vpop.f32.mrb[8].mxu1 }
 0x245   : > { %v1126_v13 = vpop.f32.mrb[9].mxu0  ;;  %v1228_v14 = vpop.f32.mrb[9].mxu1 }
 0x246   : > { %v854_v1 = vadd.f32 %v1063_v9, %v822_v10  ;;  %v1127_v15 = vadd.f32 %v1126_v13, %v1125_v11 }
 0x248   : > { %v827_v16 = vadd.f32 %v1127_v15, %v826_v12  ;;  %v1128_v17 = vpop.f32.mrb[10].mxu0  ;;  %v831_v18 = vpop.f32.mrb[10].mxu1  ;;  %v857_v19 = vadd.f32 %v854_v1, %v1891_v21 }
 0x249   : > { %v1129_v20 = vpop.f32.mrb[11].mxu0  ;;  %v1231_v22 = vpop.f32.mrb[11].mxu1 }
 0x24a   : > { %v855_v23 = vadd.f32 %v1063_v9, %v827_v16  ;;  %v1130_v24 = vadd.f32 %v1129_v20, %v1128_v17  ;;  %860 = vadd.xlane.f32.xlu0 %v857_v19  ;;  %v869_v25 = vmul.f32 %v857_v19, %v857_v19 }
 0x24c   : > { %v832_v26 = vadd.f32 %v1130_v24, %v831_v18  ;;  %872 = vadd.xlane.f32.xlu1 %v869_v25  ;;  %v858_v27 = vadd.f32 %v855_v23, %v1897_v31 }
 0x24e   : > { %v856_v28 = vadd.f32 %v1063_v9, %v832_v26  ;;  %862 = vadd.xlane.f32.xlu0 %v858_v27  ;;  %v870_v29 = vmul.f32 %v858_v27, %v858_v27 }
 0x250   : > { %v859_v30 = vadd.f32 %v856_v28, %v1906_v41 }
 0x252   : > { %874 = vadd.xlane.f32.xlu0 %v870_v29  ;;  %864 = vadd.xlane.f32.xlu1 %v859_v30  ;;  %v871_v32 = vmul.f32 %v859_v30, %v859_v30 }
 0x256   : > { %876 = vadd.xlane.f32.xlu1 %v871_v32 }
 0x2d7   : > { %v861_v21 = vpop.xlane.xlu0 %860 }
 0x2d8   : > { %v866_v33 = vmul.f32 0.008333334, %v861_v21 }
 0x2d9   : > { %v873_v34 = vpop.xlane.xlu1 %872 }
 0x2da   : > { %v881_v35 = vmul.f32 %v866_v33, %v866_v33  ;;  %v878_v36 = vmul.f32 0.008333334, %v873_v34  ;;  %v887_v51 = vsub.f32 %v857_v19, %v866_v33 }
 0x2db   : > { %v863_v37 = vpop.xlane.xlu0 %862 }
 0x2dc   : > { %v884_v0 = vsub.f32 %v878_v36, %v881_v35  ;;  %v867_v38 = vmul.f32 0.008333334, %v863_v37 }
 0x2de   : > { %v890_v39 = vadd.f32 1e-05, %v884_v0  ;;  %v882_v42 = vmul.f32 %v867_v38, %v867_v38  ;;  %v888_v58 = vsub.f32 %v858_v27, %v867_v38 }
 0x2df   : > { %v875_v40 = vpop.xlane.xlu0 %874  ;;  %v865_v31 = vpop.xlane.xlu1 %864 }
 0x2e0   : > { %1438 = vrsqrt.f32 %v890_v39  ;;  %v879_v43 = vmul.f32 0.008333334, %v875_v40  ;;  %v868_v44 = vmul.f32 0.008333334, %v865_v31 }
 0x2e2   : > { %v885_v41 = vsub.f32 %v879_v43, %v882_v42  ;;  %v883_v47 = vmul.f32 %v868_v44, %v868_v44  ;;  %v889_v62 = vsub.f32 %v859_v30, %v868_v44 }
 0x2e3   : > { %v877_v45 = vpop.xlane.xlu1 %876 }
 0x2e4   : > { %v891_v46 = vadd.f32 1e-05, %v885_v41  ;;  %v880_v48 = vmul.f32 0.008333334, %v877_v45 }
 0x2e6   : > { %1440 = vrsqrt.f32 %v891_v46  ;;  %v886_v49 = vsub.f32 %v880_v48, %v883_v47 }
 0x2e8   : > { %v892_v50 = vadd.f32 1e-05, %v886_v49 }
 0x2ea   : > { %v1439_v52 = vpop.eup %1438  ;;  %1442 = vrsqrt.f32 %v892_v50 }
 0x2eb   : > { %v896_v54 = vmul.f32 %v1439_v52, %v887_v51 }
 0x2ed   : > { %v906_v56 = vmul.f32 %v1064_v53, %v896_v54 }
 0x2ef   : > { %v916_v57 = vadd.f32 %v1065_v55, %v906_v56 }
 0x2f0   : > { %v1441_v59 = vpop.eup %1440 }
 0x2f1   : > { %v897_v60 = vmul.f32 %v1441_v59, %v888_v58  ;;  %919 = vst [vmem:[%s367_s18] sm:$0xff] %v916_v57 }
 0x2f3   : > { %v907_v61 = vmul.f32 %v1064_v53, %v897_v60 }
 0x2f4   : > { %v1443_v63 = vpop.eup %1442 }
 0x2f5   : > { %v917_v2 = vadd.f32 %v1065_v55, %v907_v61  ;;  %v898_v3 = vmul.f32 %v1443_v63, %v889_v62 }
 0x2f7   : > { %v908_v4 = vmul.f32 %v1064_v53, %v898_v3  ;;  %920 = vst [vmem:[%s367_s18 + $0x8] sm:$0xff] %v917_v2 }
 0x2f9   : > { %v918_v5 = vadd.f32 %v1065_v55, %v908_v4 }
 0x2fb   : > { %921 = vst [vmem:[%s367_s18 + $0x10] sm:$0xff] %v918_v5 }
 0x2fc   : > { %1543 = shalt.err (!%p1540_p2)
}
 0x2fd   : > { %s1544_s17 = scalar_lea.hbm %s1946_s9, 384  ;;  %s1548_s21 = scalar_lea.hbm %s2004_s7, 768 }
 0x2fe   : > { %p1545_p0 = scmp.ne.s32.totalorder %s1946_s9, %s1544_s17  ;;  %p1549_p6 = scmp.lt.u32.totalorder %s1946_s9, %s2004_s7 }
 0x2ff   : > { %p1550_p7 = scmp.lt.u32.totalorder %s1548_s21, %s1544_s17  ;;  %p1552_p8 = scmp.lt.u32.totalorder %s1544_s17, %s1946_s9 }
 0x300   : > { %p1546_p4 = pnand %p1545_p0, %p2027_p12 }
 0x301   : > { %p1551_p11 = por %p1550_p7, %p1549_p6 }
 0x302   : > { %p1547_p13 = pneg %p1546_p4 }
 0x303   : > { %p1553_p1 = por %p1552_p8, %p1551_p11 }
 0x305   : > { %p1554_p10 = pnand %p1553_p1, %p1547_p13 }
 0x307   : > { %1557 = shalt.err (!%p1554_p10)
}
 0x308   : > { %s1629_s23 = smov 128   ;;  %s1630_s30 = smov 8  }
 0x309   : > { %1356 = dma.vmem_to_hbm [thread:$0]  (%p2027_p12), %s1948_s14, 384, %s1946_s9, %s923_s10, %s1629_s23, %s1629_s23, %s1630_s30  }
 0x30a PF: > { %s2028_s11 = sld [smem:[#allocation13_spill]]  ;;  %s2029_s27 = sld [smem:[#allocation14_spill]] }
 0x30b   : > { %p2031_p5 = scmp.ge.s32.totalorder %s1616_s29, 2 }
 0x310   : > { %s951_s13 = sand.u32 1, %s2028_s11   ;;  %p2030_p3 = scmp.ne.s32.totalorder %s2029_s27, 0 }
 0x311   : > { %s952_s24 = scalar_lea.sflag [#allocation5], %s951_s13 }
 0x312   : > { %p1370_p9 = pnand %p2031_p5, %p2030_p3 }
 0x314   : > { %1591 = dma.done.wait (!%p1370_p9), %s952_s24, 384  }
 0x315   : > { %1593 = vsyncadd (!%p1370_p9), %s952_s24, 4294966912  ;;  %s24_s29 = sadd.s32 1, %s1616_s29   ;;  %s2032_s24 = smov %s1600_s25 }
 0x316   : > { %p21_p2 = scmp.ge.s32.totalorder %s24_s29, 4   ;;  %s2033_s25 = smov %s1604_s26 }
 0x317   : > { %s2034_s26 = smov %s1819_s8  ;;  %s2035_s27 = smov %s1612_s28 }
 0x318   : > { %s2036_s28 = smov %s2038_s20  ;;  %23 = sbr.rel (!%p21_p2) target bundleno = 7 (0x7), region = 114 }
 0x31f   :  { %957 = vsyncpa [#allocation4], 1 }
 0x320   :  { %959 = vsyncpa [#allocation4 + $0x1], 1 }
 0x321   :  { %960 = vsyncpa [#allocation7], 1 }
 0x322   :  { %961 = vsyncpa [#allocation5], 1 }
 0x323   :  { %963 = vsyncpa [#allocation5 + $0x1], 1 }

</bundles_post_ra>
